<compile_context>
chip_gen: v6e
topology: v6e:2x2x1
jax: 0.10.0
libtpu: 0.0.40
codegen_flags: <defaults>
</compile_context>

<pallas_src>
import functools

import jax
import jax.numpy as jnp
from jax import lax
from jax.experimental import pallas as pl
from jax.experimental.pallas import tpu as pltpu


_MIB = 1 << 20
# Conservative stripe budget for the fused path: 2x(in+out) blocks + f32 temps
# must stay under this; +8 MiB headroom keeps the explicit limit <= 44 MiB,
# safe on every generation (v7x: 64 MiB physical; v5e/v6e: 128 MiB).
_FUSED_BUDGET_BYTES = 36 * _MIB


def _divisor_tile(total: int, unit: int, cap: int) -> int:
    """Largest divisor of `total` that is a multiple of `unit` and <= cap.
    If `total` is not a multiple of `unit`, returns `total` (a full-extent
    block is always layout-legal)."""
    if total % unit != 0:
        return total
    cap = max(unit, min(cap, total))
    best, t = unit, unit
    while t <= cap:
        if total % t == 0:
            best = t
        t += unit
    return best


def _channel_unit(itemsize: int) -> int:
    """Sublane alignment unit for the channel axis: 8 f32, 16 bf16, 32 int8."""
    return max(8, 32 // max(1, itemsize))


def _choose_stream_tiles(C, HW, itemsize, *, c_unit, target_bytes, c_cap):
    """Pick (c_tile, hw_tile): grow the lane (HW) axis first toward the
    per-block byte target, then grow the channel tile within c_cap."""
    if HW % 128 != 0:
        hw_tile = HW                        # full-extent block is always legal
    else:
        hw_cap = max(128, target_bytes // (c_unit * itemsize))
        hw_tile = _divisor_tile(HW, 128, hw_cap)
    c_max = max(c_unit, min(c_cap, target_bytes // max(1, hw_tile * itemsize)))
    c_tile = _divisor_tile(C, c_unit, c_max)
    return c_tile, hw_tile


def _fused_c_tile(N, C, HW, itemsize, c_unit, budget_bytes):
    """Channel tile for the single-pass path, or None if it can't fit.
    Per-channel footprint: 2x input block + 2x output block (pipelined) plus
    ~2x f32 in-kernel temporaries (upcast + centered)."""
    per_chan = N * HW * (4 * itemsize + 2 * 4)
    if C % c_unit != 0:
        return C if C * per_chan <= budget_bytes else None
    c_max = budget_bytes // per_chan
    if c_max < c_unit:
        return None
    # Prefer >=2 channel blocks so both v7x TensorCores get work.
    c_cap = min(c_max, C // 2) if C // 2 >= c_unit else c_max
    return _divisor_tile(C, c_unit, c_cap)


def _vmem_limit(footprint_bytes: int) -> int:
    """Explicit scoped-VMEM limit: footprint + headroom, <= 48 MiB (safe on
    v7x's 64 MiB physical VMEM; v5e/v6e have 128 MiB)."""
    return int(min(max(footprint_bytes + 8 * _MIB, 16 * _MIB), 48 * _MIB))


# ----------------------------------------------------------------------------
# Kernels
# ----------------------------------------------------------------------------

def _bn_fused_kernel(x_ref, w_ref, b_ref, rm_ref, rv_ref,
                     y_ref, nrm_ref, nrv_ref,
                     *, momentum, eps, m_total):
    """Single pass over a resident (N, c_tile, HW) channel stripe."""
    x = x_ref[...].astype(jnp.float32)                     # (N, c_tile, HW)
    mean3 = jnp.mean(x, axis=(0, 2), keepdims=True)        # (1, c_tile, 1)
    centered = x - mean3
    m2 = jnp.sum(centered * centered, axis=(0, 2), keepdims=True)[0]  # (c,1)
    mean = mean3[0]                                        # (c_tile, 1)

    var_b = m2 * (1.0 / m_total)
    bessel = (1.0 / (m_total - 1.0)) if m_total > 1.0 else 1.0
    var_u = m2 * bessel
    inv_std = lax.rsqrt(var_b + eps)                       # EUP slot
    scale = w_ref[...] * inv_std                           # (c_tile, 1)

    y_ref[...] = (centered * scale[None] + b_ref[...][None]).astype(y_ref.dtype)
    nrm_ref[...] = (1.0 - momentum) * rm_ref[...] + momentum * mean
    nrv_ref[...] = (1.0 - momentum) * rv_ref[...] + momentum * var_u


def _bn_stats_kernel(x_ref, w_ref, b_ref, rm_ref, rv_ref,
                     scale_ref, shift_ref, nrm_ref, nrv_ref,
                     mean_acc, m2_acc,
                     *, momentum, eps, m_total):
    n_i = pl.program_id(1)
    h_i = pl.program_id(2)
    n_n = pl.num_programs(1)
    n_h = pl.num_programs(2)
    step = n_i * n_h + h_i              # linear reduction step per channel block

    @pl.when(step == 0)
    def _():
        mean_acc[...] = jnp.zeros_like(mean_acc)
        m2_acc[...] = jnp.zeros_like(m2_acc)

    x = x_ref[...].astype(jnp.float32)                      # (c_tile, hw_tile)
    t = float(x.shape[-1])                                  # elems/tile/channel

    tile_mean = jnp.mean(x, axis=-1, keepdims=True)         # (c_tile, 1)
    centered = x - tile_mean
    tile_m2 = jnp.sum(centered * centered, axis=-1, keepdims=True)

    # Chan parallel combine (prior batch: k tiles of t elems, new batch: 1 tile).
    # Scalar reciprocal -> no per-step vector divides.
    k_f = step.astype(jnp.float32)
    inv_kp1 = 1.0 / (k_f + 1.0)                             # scalar op
    delta = tile_mean - mean_acc[...]
    mean_acc[...] = mean_acc[...] + delta * inv_kp1
    m2_acc[...] = m2_acc[...] + tile_m2 + (delta * delta) * (t * k_f * inv_kp1)

    @pl.when(step == n_n * n_h - 1)
    def _():
        mean = mean_acc[...]
        m2 = m2_acc[...]
        var_b = m2 * (1.0 / m_total)
        bessel = (1.0 / (m_total - 1.0)) if m_total > 1.0 else 1.0
        var_u = m2 * bessel
        inv_std = lax.rsqrt(var_b + eps)                    # EUP slot
        scale = w_ref[...] * inv_std
        scale_ref[...] = scale
        shift_ref[...] = b_ref[...] - mean * scale
        nrm_ref[...] = (1.0 - momentum) * rm_ref[...] + momentum * mean
        nrv_ref[...] = (1.0 - momentum) * rv_ref[...] + momentum * var_u


def _bn_apply_kernel(x_ref, scale_ref, shift_ref, o_ref):
    x = x_ref[...].astype(jnp.float32)
    o_ref[...] = (x * scale_ref[...] + shift_ref[...]).astype(o_ref.dtype)


# ----------------------------------------------------------------------------
# Wrapper
# ----------------------------------------------------------------------------

def bn_forward(x, weight, bias, running_mean, running_var,
               momentum=0.1, eps=0.0, *, force_two_pass=False):
    """Training-mode BN forward. Returns (y, new_running_mean, new_running_var)."""
    N, C, H, W = x.shape
    HW = H * W
    xr = x.reshape(N, C, HW)                    # trailing-dim reshape: no copy

    itemsize = x.dtype.itemsize
    c_unit = _channel_unit(itemsize)
    m_total = float(N * HW)
    momentum = float(momentum)
    eps = float(eps)
    x_bytes = N * C * HW * itemsize

    w2 = weight.reshape(C, 1).astype(jnp.float32)
    b2 = bias.reshape(C, 1).astype(jnp.float32)
    rm2 = running_mean.reshape(C, 1).astype(jnp.float32)
    rv2 = running_var.reshape(C, 1).astype(jnp.float32)

    # ---- fused single-pass path: channel stripe resident in VMEM -----------
    c_tile_f = None if force_two_pass else _fused_c_tile(
        N, C, HW, itemsize, c_unit, _FUSED_BUDGET_BYTES)

    if c_tile_f is not None:
        per_chan = N * HW * (4 * itemsize + 2 * 4)
        vmem_f = _vmem_limit(c_tile_f * per_chan)
        fused_kernel = functools.partial(
            _bn_fused_kernel, momentum=momentum, eps=eps, m_total=m_total)
        x_spec = pl.BlockSpec((N, c_tile_f, HW), lambda c: (0, c, 0))
        cvec_spec = pl.BlockSpec((c_tile_f, 1), lambda c: (c, 0))

        y, new_rm, new_rv = pl.pallas_call(
            fused_kernel,
            out_shape=(
                jax.ShapeDtypeStruct((N, C, HW), x.dtype),
                jax.ShapeDtypeStruct((C, 1), jnp.float32),
                jax.ShapeDtypeStruct((C, 1), jnp.float32),
            ),
            grid=(C // c_tile_f,),
            in_specs=[x_spec, cvec_spec, cvec_spec, cvec_spec, cvec_spec],
            out_specs=(x_spec, cvec_spec, cvec_spec),
            compiler_params=pltpu.CompilerParams(
                dimension_semantics=("parallel",),
                vmem_limit_bytes=vmem_f),
            cost_estimate=pl.CostEstimate(
                flops=int(8 * N * C * HW),
                transcendentals=int(C),
                bytes_accessed=int(2 * x_bytes)),
        )(xr, w2, b2, rm2, rv2)
        return (y.reshape(N, C, H, W),
                new_rm.reshape(C).astype(running_mean.dtype),
                new_rv.reshape(C).astype(running_var.dtype))

    # ---- two-pass streaming fallback ----------------------------------------
    # Pass 1 (stats): footprint is only 2x the input block -> larger tiles.
    c_tile_s, hw_tile_s = _choose_stream_tiles(
        C, HW, itemsize, c_unit=c_unit, target_bytes=4 * _MIB, c_cap=128)
    # Prefer >=2 channel blocks on the only "parallel" axis (v7x megacore).
    if C % c_unit == 0 and C // c_tile_s < 2 and C // 2 >= c_unit:
        c_tile_s = _divisor_tile(C, c_unit, C // 2)
    grid_s = (C // c_tile_s, N, HW // hw_tile_s)

    x_spec_s = pl.BlockSpec((None, c_tile_s, hw_tile_s),
                            lambda c, n, h: (n, c, h))
    cvec_spec_s = pl.BlockSpec((c_tile_s, 1), lambda c, n, h: (c, 0))
    blk_s = c_tile_s * hw_tile_s
    vmem_s = _vmem_limit(2 * blk_s * itemsize + blk_s * 4)

    stats_kernel = functools.partial(
        _bn_stats_kernel, momentum=momentum, eps=eps, m_total=m_total)

    scale, shift, new_rm, new_rv = pl.pallas_call(
        stats_kernel,
        out_shape=(jax.ShapeDtypeStruct((C, 1), jnp.float32),) * 4,
        grid=grid_s,
        in_specs=[x_spec_s, cvec_spec_s, cvec_spec_s, cvec_spec_s, cvec_spec_s],
        out_specs=(cvec_spec_s,) * 4,
        scratch_shapes=[pltpu.VMEM((c_tile_s, 1), jnp.float32),
                        pltpu.VMEM((c_tile_s, 1), jnp.float32)],
        compiler_params=pltpu.CompilerParams(
            dimension_semantics=("parallel", "arbitrary", "arbitrary"),
            vmem_limit_bytes=vmem_s),
        cost_estimate=pl.CostEstimate(
            flops=int(4 * N * C * HW),
            transcendentals=int(C),
            bytes_accessed=int(x_bytes)),
    )(xr, w2, b2, rm2, rv2)

    # Pass 2 (apply): 2x in + 2x out pipelined -> smaller byte target.
    c_tile_a, hw_tile_a = _choose_stream_tiles(
        C, HW, itemsize, c_unit=c_unit, target_bytes=2 * _MIB, c_cap=256)
    grid_a = (C // c_tile_a, N, HW // hw_tile_a)
    x_spec_a = pl.BlockSpec((None, c_tile_a, hw_tile_a),
                            lambda c, n, h: (n, c, h))
    cvec_spec_a = pl.BlockSpec((c_tile_a, 1), lambda c, n, h: (c, 0))
    blk_a = c_tile_a * hw_tile_a
    vmem_a = _vmem_limit(4 * blk_a * itemsize + blk_a * 4)

    y = pl.pallas_call(
        _bn_apply_kernel,
        out_shape=jax.ShapeDtypeStruct((N, C, HW), x.dtype),
        grid=grid_a,
        in_specs=[x_spec_a, cvec_spec_a, cvec_spec_a],
        out_specs=x_spec_a,
        compiler_params=pltpu.CompilerParams(
            dimension_semantics=("parallel", "parallel", "parallel"),
            vmem_limit_bytes=vmem_a),
        cost_estimate=pl.CostEstimate(
            flops=int(2 * N * C * HW),
            transcendentals=0,
            bytes_accessed=int(2 * x_bytes)),
    )(xr, scale, shift)

    return (y.reshape(N, C, H, W),
            new_rm.reshape(C).astype(running_mean.dtype),
            new_rv.reshape(C).astype(running_var.dtype))


# ----------------------------------------------------------------------------
# Pure-JAX reference (mirrors the PyTorch module in training mode)
# ----------------------------------------------------------------------------

def _bn_reference(x, weight, bias, running_mean, running_var,
                  momentum=0.1, eps=0.0):
    mean = jnp.mean(x, axis=(0, 2, 3))
    var_b = jnp.mean((x - mean[None, :, None, None]) ** 2, axis=(0, 2, 3))
    n = x.shape[0] * x.shape[2] * x.shape[3]
    var_u = var_b * (n / (n - 1))
    w = weight[None, :, None, None]
    b = bias[None, :, None, None]
    y = w * (x - mean[None, :, None, None]) / jnp.sqrt(
        var_b[None, :, None, None] + eps) + b
    new_rm = (1 - momentum) * running_mean + momentum * mean
    new_rv = (1 - momentum) * running_var + momentum * var_u
    return y, new_rm, new_rv


if __name__ == "__main__":
    key = jax.random.PRNGKey(0)
    kx, kw, kb = jax.random.split(key, 3)
    N, C, H, W = 2, 4, 16, 16
    x = jax.random.normal(kx, (N, C, H, W), dtype=jnp.float32)

    # Parameters / buffers as in BN.__init__ (dim = C); nontrivial affine to
    # exercise the scale/shift path.
    weight = 1.0 + 0.1 * jax.random.normal(kw, (C,), dtype=jnp.float32)
    bias = 0.1 * jax.random.normal(kb, (C,), dtype=jnp.float32)
    running_mean = jnp.zeros((C,), jnp.float32)
    running_var = jnp.ones((C,), jnp.float32)

    y_ref, rm_ref, rv_ref = _bn_reference(x, weight, bias, running_mean,
                                          running_var, momentum=0.1, eps=0.0)

    # Fused single-pass path.
    y, nrm, nrv = bn_forward(x, weight, bias, running_mean, running_var,
                             momentum=0.1, eps=0.0)
    jax.block_until_ready((y, nrm, nrv))
    assert jnp.allclose(y, y_ref, atol=1e-5, rtol=1e-5)
    assert jnp.allclose(nrm, rm_ref, atol=1e-6)
    assert jnp.allclose(nrv, rv_ref, atol=1e-5)

    # Two-pass streaming fallback path (exercised explicitly).
    y2, nrm2, nrv2 = bn_forward(x, weight, bias, running_mean, running_var,
                                momentum=0.1, eps=0.0, force_two_pass=True)
    jax.block_until_ready((y2, nrm2, nrv2))
    assert jnp.allclose(y2, y_ref, atol=1e-5, rtol=1e-5)
    assert jnp.allclose(nrm2, rm_ref, atol=1e-6)
    assert jnp.allclose(nrv2, rv_ref, atol=1e-5)

    # TODO(synk): eval-mode (running-stats) normalization path not implemented;
    # the module defaults to training=True which is what this kernel covers.
    print("KERNEL_OK")
</pallas_src>

<mosaic_0001>
module attributes {stable_mosaic.version = 11 : i64} {
  func.func @_bn_fused_kernel(%arg0: i32, %arg1: memref<2x4x256xf32, #tpu.memory_space<vmem>>, %arg2: memref<4x1xf32, #tpu.memory_space<vmem>>, %arg3: memref<4x1xf32, #tpu.memory_space<vmem>>, %arg4: memref<4x1xf32, #tpu.memory_space<vmem>>, %arg5: memref<4x1xf32, #tpu.memory_space<vmem>>, %arg6: memref<2x4x256xf32, #tpu.memory_space<vmem>>, %arg7: memref<4x1xf32, #tpu.memory_space<vmem>>, %arg8: memref<4x1xf32, #tpu.memory_space<vmem>>) attributes {dimension_semantics = [#tpu.dimension_semantics<parallel>], iteration_bounds = array<i64: 1>, scalar_prefetch = 0 : i64, scratch_operands = 0 : i64, tpu.core_type = #tpu.core_type<tc>, window_params = [{transform_indices = @transform_0, window_bounds = array<i64: 2, 4, 256>}, {transform_indices = @transform_1, window_bounds = array<i64: 4, 1>}, {transform_indices = @transform_2, window_bounds = array<i64: 4, 1>}, {transform_indices = @transform_3, window_bounds = array<i64: 4, 1>}, {transform_indices = @transform_4, window_bounds = array<i64: 4, 1>}, {transform_indices = @transform_5, window_bounds = array<i64: 2, 4, 256>}, {transform_indices = @transform_6, window_bounds = array<i64: 4, 1>}, {transform_indices = @transform_7, window_bounds = array<i64: 4, 1>}]} {
    %c0 = arith.constant 0 : index
    %c0_0 = arith.constant 0 : index
    %c0_1 = arith.constant 0 : index
    %0 = vector.load %arg1[%c0, %c0_0, %c0_1] : memref<2x4x256xf32, #tpu.memory_space<vmem>>, vector<2x4x256xf32>
    %cst = arith.constant dense<0.000000e+00> : vector<4xf32>
    %1 = vector.multi_reduction <add>, %0, %cst [0, 2] : vector<2x4x256xf32> to vector<4xf32>
    %2 = vector.shape_cast %1 : vector<4xf32> to vector<1x4x1xf32>
    %cst_2 = arith.constant 5.120000e+02 : f32
    %3 = vector.broadcast %cst_2 : f32 to vector<1x4x1xf32>
    %4 = arith.divf %2, %3 : vector<1x4x1xf32>
    %5 = vector.broadcast %4 : vector<1x4x1xf32> to vector<2x4x256xf32>
    %6 = arith.subf %0, %5 : vector<2x4x256xf32>
    %7 = arith.mulf %6, %6 : vector<2x4x256xf32>
    %cst_3 = arith.constant dense<0.000000e+00> : vector<4xf32>
    %8 = vector.multi_reduction <add>, %7, %cst_3 [0, 2] : vector<2x4x256xf32> to vector<4xf32>
    %9 = vector.shape_cast %8 : vector<4xf32> to vector<1x4x1xf32>
    %10 = vector.shape_cast %9 : vector<1x4x1xf32> to vector<4x1xf32>
    %11 = vector.shape_cast %4 : vector<1x4x1xf32> to vector<4x1xf32>
    %cst_4 = arith.constant 0.001953125 : f32
    %12 = vector.broadcast %cst_4 : f32 to vector<4x1xf32>
    %13 = arith.mulf %10, %12 : vector<4x1xf32>
    %cst_5 = arith.constant 0.00195694715 : f32
    %14 = vector.broadcast %cst_5 : f32 to vector<4x1xf32>
    %15 = arith.mulf %10, %14 : vector<4x1xf32>
    %cst_6 = arith.constant 0.000000e+00 : f32
    %16 = vector.broadcast %cst_6 : f32 to vector<4x1xf32>
    %17 = arith.addf %13, %16 : vector<4x1xf32>
    %18 = math.rsqrt %17 : vector<4x1xf32>
    %c0_7 = arith.constant 0 : index
    %c0_8 = arith.constant 0 : index
    %19 = vector.load %arg2[%c0_7, %c0_8] : memref<4x1xf32, #tpu.memory_space<vmem>>, vector<4x1xf32>
    %20 = arith.mulf %19, %18 : vector<4x1xf32>
    %21 = vector.shape_cast %20 : vector<4x1xf32> to vector<1x4x1xf32>
    %22 = vector.broadcast %21 : vector<1x4x1xf32> to vector<2x4x256xf32>
    %23 = arith.mulf %6, %22 : vector<2x4x256xf32>
    %c0_9 = arith.constant 0 : index
    %c0_10 = arith.constant 0 : index
    %24 = vector.load %arg3[%c0_9, %c0_10] : memref<4x1xf32, #tpu.memory_space<vmem>>, vector<4x1xf32>
    %25 = vector.shape_cast %24 : vector<4x1xf32> to vector<1x4x1xf32>
    %26 = vector.broadcast %25 : vector<1x4x1xf32> to vector<2x4x256xf32>
    %27 = arith.addf %23, %26 : vector<2x4x256xf32>
    %c0_11 = arith.constant 0 : index
    %c0_12 = arith.constant 0 : index
    %c0_13 = arith.constant 0 : index
    %28 = vector.load %arg6[%c0_11, %c0_12, %c0_13] : memref<2x4x256xf32, #tpu.memory_space<vmem>>, vector<2x4x256xf32>
    tpu.vector_store %arg6[%c0_11, %c0_12, %c0_13], %27 {strides = array<i32>} : memref<2x4x256xf32, #tpu.memory_space<vmem>>, vector<2x4x256xf32>,
    %c0_14 = arith.constant 0 : index
    %c0_15 = arith.constant 0 : index
    %29 = vector.load %arg4[%c0_14, %c0_15] : memref<4x1xf32, #tpu.memory_space<vmem>>, vector<4x1xf32>
    %cst_16 = arith.constant 0.899999976 : f32
    %30 = vector.broadcast %cst_16 : f32 to vector<4x1xf32>
    %31 = arith.mulf %30, %29 : vector<4x1xf32>
    %cst_17 = arith.constant 1.000000e-01 : f32
    %32 = vector.broadcast %cst_17 : f32 to vector<4x1xf32>
    %33 = arith.mulf %32, %11 : vector<4x1xf32>
    %34 = arith.addf %31, %33 : vector<4x1xf32>
    %c0_18 = arith.constant 0 : index
    %c0_19 = arith.constant 0 : index
    %35 = vector.load %arg7[%c0_18, %c0_19] : memref<4x1xf32, #tpu.memory_space<vmem>>, vector<4x1xf32>
    tpu.vector_store %arg7[%c0_18, %c0_19], %34 {strides = array<i32>} : memref<4x1xf32, #tpu.memory_space<vmem>>, vector<4x1xf32>,
    %c0_20 = arith.constant 0 : index
    %c0_21 = arith.constant 0 : index
    %36 = vector.load %arg5[%c0_20, %c0_21] : memref<4x1xf32, #tpu.memory_space<vmem>>, vector<4x1xf32>
    %cst_22 = arith.constant 0.899999976 : f32
    %37 = vector.broadcast %cst_22 : f32 to vector<4x1xf32>
    %38 = arith.mulf %37, %36 : vector<4x1xf32>
    %cst_23 = arith.constant 1.000000e-01 : f32
    %39 = vector.broadcast %cst_23 : f32 to vector<4x1xf32>
    %40 = arith.mulf %39, %15 : vector<4x1xf32>
    %41 = arith.addf %38, %40 : vector<4x1xf32>
    %c0_24 = arith.constant 0 : index
    %c0_25 = arith.constant 0 : index
    %42 = vector.load %arg8[%c0_24, %c0_25] : memref<4x1xf32, #tpu.memory_space<vmem>>, vector<4x1xf32>
    tpu.vector_store %arg8[%c0_24, %c0_25], %41 {strides = array<i32>} : memref<4x1xf32, #tpu.memory_space<vmem>>, vector<4x1xf32>,
    return
  }
  func.func @transform_0(%arg0: i32) -> (i32, i32, i32) {
    %c0_i32 = arith.constant 0 : i32
    %c0_i32_0 = arith.constant 0 : i32
    %c0_i32_1 = arith.constant 0 : i32
    return %c0_i32, %arg0, %c0_i32_0 : i32, i32, i32
  }
  func.func @transform_1(%arg0: i32) -> (i32, i32) {
    %c0_i32 = arith.constant 0 : i32
    %c0_i32_0 = arith.constant 0 : i32
    return %arg0, %c0_i32 : i32, i32
  }
  func.func @transform_2(%arg0: i32) -> (i32, i32) {
    %c0_i32 = arith.constant 0 : i32
    %c0_i32_0 = arith.constant 0 : i32
    return %arg0, %c0_i32 : i32, i32
  }
  func.func @transform_3(%arg0: i32) -> (i32, i32) {
    %c0_i32 = arith.constant 0 : i32
    %c0_i32_0 = arith.constant 0 : i32
    return %arg0, %c0_i32 : i32, i32
  }
  func.func @transform_4(%arg0: i32) -> (i32, i32) {
    %c0_i32 = arith.constant 0 : i32
    %c0_i32_0 = arith.constant 0 : i32
    return %arg0, %c0_i32 : i32, i32
  }
  func.func @transform_5(%arg0: i32) -> (i32, i32, i32) {
    %c0_i32 = arith.constant 0 : i32
    %c0_i32_0 = arith.constant 0 : i32
    %c0_i32_1 = arith.constant 0 : i32
    return %c0_i32, %arg0, %c0_i32_0 : i32, i32, i32
  }
  func.func @transform_6(%arg0: i32) -> (i32, i32) {
    %c0_i32 = arith.constant 0 : i32
    %c0_i32_0 = arith.constant 0 : i32
    return %arg0, %c0_i32 : i32, i32
  }
  func.func @transform_7(%arg0: i32) -> (i32, i32) {
    %c0_i32 = arith.constant 0 : i32
    %c0_i32_0 = arith.constant 0 : i32
    return %arg0, %c0_i32 : i32, i32
  }
}

</mosaic_0001>

<bundles_post_ra>
// kernel: tpu_custom_call.1
= control target key start
LH: loop header
LB: loop body
LE: loop exit
PB: predicated region body
PF: predicated region fallthrough
CT: control target
= control target key end

     0   :  { %vm32_vm0 = vcmask 1043456   ;;  %s259_s0 = inlined_call_operand.vmem [shape: f32[2,4,256], index: 0, kind: input, shape index: {}]   ;;  %s260_s1 = inlined_call_operand.vmem [shape: f32[4,1], index: 1, kind: input, shape index: {}]   ;;  %s261_s2 = inlined_call_operand.vmem [shape: f32[4,1], index: 2, kind: input, shape index: {}]   ;;  %s262_s3 = inlined_call_operand.vmem [shape: f32[4,1], index: 3, kind: input, shape index: {}]   ;;  %s263_s4 = inlined_call_operand.vmem [shape: f32[4,1], index: 4, kind: input, shape index: {}]   ;;  %s264_s5 = inlined_call_operand.hbm [shape: f32[2,4,256], index: 5, kind: output, shape index: {0}]   ;;  %s265_s6 = inlined_call_operand.vmem [shape: f32[4,1], index: 6, kind: output, shape index: {1}]   ;;  %s266_s7 = inlined_call_operand.vmem [shape: f32[4,1], index: 7, kind: output, shape index: {2}]  }
   0x1   :  { %v24_v0 = vld [vmem:[%s259_s0] sm:$0xff]  ;;  %v25_v1 = vld [vmem:[%s259_s0 + $0x8] sm:$0xff] }
   0x2   :  { %v28_v2 = vcombine.high %v24_v0, %v24_v0  ;;  %v29_v3 = vcombine.high %v25_v1, %v25_v1  ;;  %v33_v4 = vsel %vm32_vm0, %v24_v0, 0.0 }
   0x3   :  { %13 = vsyncpa [#allocation3], 0  ;;  %v36_v6 = vsel %vm32_vm0, %v25_v1, 0.0  ;;  %v177_v11 = vmov 839922192   ;;  %v48_v13 = vlaneseq  ;;  %vm113_vm1 = vcmask 3072  }
   0x4   :  { %v34_v5 = vsel %vm32_vm0, %v28_v2, 0.0  ;;  %v38_v8 = vsel %vm32_vm0, %v29_v3, 0.0  ;;  %v46_v12 = vunpack.c.l.s4 %v177_v11  ;;  %v109_v16 = vld [vmem:[%s262_s3] sm:$0xf]  ;;  %v178_v37 = vmov 0   ;;  %s179_s13 = smov [#allocation2]  }
   0x5   :  { %v35_v7 = vadd.f32 %v34_v5, %v33_v4  ;;  %v49_v15 = vshrl.u32 %v48_v13, 7  ;;  %v110_v19 = vmul.f32 0.9, %v109_v16  ;;  %149 = vset.pattern.permute.xlu1 %v178_v37  ;;  %150 = vset.pattern.permute.xlu0 %v178_v37  ;;  %v115_v38 = vld [vmem:[%s263_s4] sm:$0xf]  ;;  %s125_s14 = sshll.u32 %s179_s13, 4  ;;  %s126_s14 = int_to_ptr.vmem [resolvable:$true] %s125_s14 }
   0x6   :  { %v47_v14 = vunpack.c.0.s8 %v46_v12  ;;  %v116_v40 = vmul.f32 0.9, %v115_v38  ;;  %v76_v45 = vld [vmem:[%s260_s1] sm:$0xf]  ;;  %s155_s1 = scalar_lea.vmem %s126_s14, 256  ;;  %p160_p1 = scmp.lt.s32.totalorder %s126_s14, %s126_s14 }
   0x7   :  { %v37_v9 = vadd.f32 %v36_v6, %v35_v7  ;;  %v92_v48 = vld [vmem:[%s261_s2] sm:$0xf]  ;;  %p156_p0 = scmp.ne.s32.totalorder %s126_s14, %s155_s1  ;;  %p161_p2 = scmp.lt.s32.totalorder %s155_s1, %s155_s1 }
   0x8   :  { %v50_v17 = vsub.s32 %v47_v14, %v49_v15 }
   0x9   :  { %v39_v10 = vadd.f32 %v38_v8, %v37_v9  ;;  %p162_p3 = por %p161_p2, %p160_p1 }
   0xb   :  { %40 = vadd.xlane.f32.xlu0 %v39_v10  ;;  %p163_p4 = pnand %p162_p3, %p156_p0 }
  0x94   :  { %v41_v18 = vpop.xlane.xlu0 %40 }
  0x95   :  { %v43_v20 = vmul.f32 0.001953125, %v41_v18 }
  0x97   :  { %v51_v21 = vrot.slane %v43_v20, %v50_v17  ;;  %v111_v22 = vmul.f32 0.1, %v43_v20 }
  0x99   :  { %v53_v23 = vsub.f32 %v24_v0, %v51_v21  ;;  %v54_v24 = vsub.f32 %v25_v1, %v51_v21  ;;  %v112_v25 = vadd.f32 %v111_v22, %v110_v19 }
  0x9b   :  { %v55_v26 = vmul.f32 %v53_v23, %v53_v23  ;;  %v56_v27 = vmul.f32 %v54_v24, %v54_v24  ;;  %114 = vst.msk [vmem:[%s265_s6] sm:$0xf] %vm113_vm1, %v112_v25 }
  0x9d   :  { %v59_v28 = vcombine.high %v55_v26, %v55_v26  ;;  %v60_v29 = vcombine.high %v56_v27, %v56_v27  ;;  %v63_v30 = vsel %vm32_vm0, %v55_v26, 0.0  ;;  %v66_v33 = vsel %vm32_vm0, %v56_v27, 0.0 }
  0x9f   :  { %v64_v31 = vsel %vm32_vm0, %v59_v28, 0.0  ;;  %v68_v35 = vsel %vm32_vm0, %v60_v29, 0.0 }
  0xa0   :  { %v65_v32 = vadd.f32 %v64_v31, %v63_v30 }
  0xa2   :  { %v67_v34 = vadd.f32 %v66_v33, %v65_v32 }
  0xa4   :  { %v69_v36 = vadd.f32 %v68_v35, %v67_v34 }
  0xa6   :  { %70 = vadd.xlane.f32.xlu0 %v69_v36 }
 0x12f   :  { %v71_v39 = vpop.xlane.xlu0 %70 }
 0x130   :  { %v72_v41 = vmul.f32 0.001953125, %v71_v39  ;;  %v73_v42 = vmul.f32 0.0019569471, %v71_v39 }
 0x132   :  { %153 = vrsqrt.f32 %v72_v41  ;;  %v117_v43 = vmul.f32 0.1, %v73_v42 }
 0x134   :  { %v118_v44 = vadd.f32 %v117_v43, %v116_v40 }
 0x136   :  { %119 = vst.msk [vmem:[%s266_s7] sm:$0xf] %vm113_vm1, %v118_v44 }
 0x13f   :  { %v154_v46 = vpop.eup %153 }
 0x140   :  { %v77_v47 = vmul.f32 %v154_v46, %v76_v45 }
 0x142   :  { %80 = vperm.xlu1 %149, %v77_v47  }
 0x146   :  { %95 = vperm.xlu1 %149, %v92_v48  }
 0x1bd   :  { %v81_v49 = vpop.permute.xlu1 %80 }
 0x1be   :  { %v88_v50 = vrot.slane %v81_v49, %v50_v17 }
 0x1c0   :  { %v90_v52 = vmul.f32 %v88_v50, %v53_v23  ;;  %v91_v53 = vmul.f32 %v88_v50, %v54_v24 }
 0x1c1   :  { %v96_v51 = vpop.permute.xlu1 %95 }
 0x1c2   :  { %v103_v54 = vrot.slane %v96_v51, %v50_v17 }
 0x1c4   :  { %v105_v55 = vadd.f32 %v103_v54, %v90_v52  ;;  %v106_v56 = vadd.f32 %v103_v54, %v91_v53 }
 0x1c6   :  { %107 = vst [vmem:[#allocation2] sm:$0xff] %v105_v55  ;;  %108 = vst [vmem:[#allocation2 + $0x8] sm:$0xff] %v106_v56 }
 0x1c7   :  { %166 = shalt.err (!%p163_p4)
}
 0x1c8   :  { %s180_s2 = smov 128   ;;  %s181_s7 = smov 8  }
 0x1c9   :  { %131 = dma.vmem_to_hbm [thread:$0]  %s126_s14, 256, %s264_s5, [#allocation3], %s180_s2, %s180_s2, %s181_s7  }
 0x1ca   :  { %175 = dma.done.wait [#allocation3], 256  }
 0x1cb   :  { %176 = vsyncadd [#allocation3], 4294967040 }
 0x1cc   :  { %143 = vsyncpa [#allocation3], 1 }

</bundles_post_ra>
